<compile_context>
chip_gen: v7x
topology: tpu7x:2x2x1
jax: 0.10.0
libtpu: 0.0.40
codegen_flags: <defaults>
</compile_context>

<pallas_src>
import jax
import jax.numpy as jnp
from jax.experimental import pallas as pl
from jax.experimental.pallas import tpu as pltpu


def _round_up(x, m):
    return ((x + m - 1) // m) * m


def _block_diag(a, b):
    """[[a, 0], [0, b]] — used to fuse the two generator MLPs into one."""
    ra, ca = a.shape
    rb, cb = b.shape
    top = jnp.concatenate([a, jnp.zeros((ra, cb), a.dtype)], axis=1)
    bot = jnp.concatenate([jnp.zeros((rb, ca), b.dtype), b], axis=1)
    return jnp.concatenate([top, bot], axis=0)


def _paramgen_kernel(mem_ref, w1_ref, b1_ref, w2_ref, b2_ref, w3_ref, b3_ref,
                     o_ref):
    # mem_ref block: (row_tile, M). Fused 3-layer MLP on the whole row slab.
    m = mem_ref[...]                                                  # (R, M)
    h1 = jnp.dot(m, w1_ref[...], preferred_element_type=jnp.float32) + b1_ref[...]
    h1 = jnp.maximum(h1, 0.0)                                         # ReLU
    h2 = jnp.dot(h1, w2_ref[...], preferred_element_type=jnp.float32) + b2_ref[...]
    h2 = jnp.maximum(h2, 0.0)                                         # ReLU
    out = jnp.dot(h2, w3_ref[...], preferred_element_type=jnp.float32) + b3_ref[...]
    o_ref[...] = out.astype(o_ref.dtype)                              # lane-dense store


def parameter_generator_pallas(memory, weight_gen_params, bias_gen_params, *,
                               input_dim, output_dim, num_nodes):
    """memory: (B, num_nodes, memory_size) f32.
    weight_gen_params / bias_gen_params: 3 x (W, b) tuples with W in (in, out).
    Returns (weights (B, N, input_dim, output_dim), biases (B, N, output_dim))."""
    B, N, M = memory.shape
    assert N == num_nodes
    R = B * N

    (w1, b1), (w2, b2), (w3, b3) = weight_gen_params
    (v1, c1), (v2, c2), (v3, c3) = bias_gen_params
    H1 = w1.shape[1]                      # 32
    H2 = w2.shape[1]                      # 5
    WO = input_dim * output_dim
    BO = output_dim
    P = WO + BO
    P_pad = _round_up(P, 128)             # lane-dense fused output width

    # ---- Fuse the two generator MLPs into one block-structured MLP --------
    w1f = jnp.concatenate([w1, v1], axis=1)                     # (M, 2*H1)
    b1f = jnp.concatenate([b1, c1]).reshape(1, 2 * H1)
    w2f = _block_diag(w2, v2)                                   # (2*H1, 2*H2)
    b2f = jnp.concatenate([b2, c2]).reshape(1, 2 * H2)
    w3f = _block_diag(w3, v3)                                   # (2*H2, P)
    w3f = jnp.pad(w3f, ((0, 0), (0, P_pad - P)))                # (2*H2, P_pad)
    b3f = jnp.pad(jnp.concatenate([b3, c3]), (0, P_pad - P)).reshape(1, P_pad)

    # ---- Flatten rows + choose a VMEM-bounded row tile ---------------------
    mem2 = memory.reshape(R, M).astype(jnp.float32)
    bytes_per_row = 4 * (M + P_pad) * 2                 # in + out, double-buffered
    budget = 24 * 1024 * 1024                           # safe on v5e/v6e/v7x
    row_tile = min(1024, _round_up(R, 8),
                   max(8, (budget // bytes_per_row) // 8 * 8))
    R_pad = _round_up(R, row_tile)
    if R_pad != R:
        mem2 = jnp.pad(mem2, ((0, R_pad - R), (0, 0)))

    weight_bytes = 4 * (w1f.size + b1f.size + w2f.size + b2f.size
                        + w3f.size + b3f.size)
    est = 2 * 4 * row_tile * (M + P_pad) + 2 * weight_bytes
    vmem_limit = int(min(48 * 2**20, max(est + (4 << 20), 16 * 2**20)))

    const = lambda i: (0, 0)
    out = pl.pallas_call(
        _paramgen_kernel,
        out_shape=jax.ShapeDtypeStruct((R_pad, P_pad), jnp.float32),
        grid_spec=pltpu.PrefetchScalarGridSpec(
            num_scalar_prefetch=0,
            grid=(R_pad // row_tile,),
            in_specs=[
                pl.BlockSpec((row_tile, M), lambda i: (i, 0)),        # memory rows
                pl.BlockSpec((M, 2 * H1), const),                     # fused L1 W
                pl.BlockSpec((1, 2 * H1), const),                     # fused L1 b
                pl.BlockSpec((2 * H1, 2 * H2), const),                # fused L2 W
                pl.BlockSpec((1, 2 * H2), const),                     # fused L2 b
                pl.BlockSpec((2 * H2, P_pad), const),                 # fused L3 W
                pl.BlockSpec((1, P_pad), const),                      # fused L3 b
            ],
            out_specs=pl.BlockSpec((row_tile, P_pad), lambda i: (i, 0)),
        ),
        compiler_params=pltpu.CompilerParams(
            dimension_semantics=("parallel",),
            vmem_limit_bytes=vmem_limit),
    )(mem2, w1f, b1f, w2f, b2f, w3f, b3f)

    out = out[:R]
    weights = out[:, :WO].reshape(B, N, input_dim, output_dim)
    biases = out[:, WO:P].reshape(B, N, output_dim)
    return weights, biases


def parameter_generator_reference(memory, weight_gen_params, bias_gen_params, *,
                                  input_dim, output_dim, num_nodes):
    """Pure-JAX mirror of the PyTorch dynamic branch (for verification)."""
    B = memory.shape[0]

    def mlp(x, params):
        (w1, b1), (w2, b2), (w3, b3) = params
        h = jax.nn.relu(x @ w1 + b1)
        h = jax.nn.relu(h @ w2 + b2)
        return h @ w3 + b3

    w = mlp(memory, weight_gen_params).reshape(B, num_nodes, input_dim, output_dim)
    b = mlp(memory, bias_gen_params).reshape(B, num_nodes, output_dim)
    return w, b


if __name__ == "__main__":
    # Small shapes consistent with the module: memory_size=32, input_dim=8,
    # output_dim=8, num_nodes=16, batch=2; memory is (B, num_nodes, memory_size).
    B, num_nodes, memory_size = 2, 16, 32
    input_dim, output_dim = 8, 8

    key0 = jax.random.PRNGKey(0)
    ks = jax.random.split(key0, 13)
    rnd = lambda k, s: 0.1 * jax.random.normal(k, s, dtype=jnp.float32)

    memory = jax.random.normal(ks[0], (B, num_nodes, memory_size), dtype=jnp.float32)

    # weight_generator: Linear(mem,32) -> ReLU -> Linear(32,5) -> ReLU -> Linear(5, in*out)
    weight_gen_params = (
        (rnd(ks[1], (memory_size, 32)), rnd(ks[2], (32,))),
        (rnd(ks[3], (32, 5)), rnd(ks[4], (5,))),
        (rnd(ks[5], (5, input_dim * output_dim)), rnd(ks[6], (input_dim * output_dim,))),
    )
    # bias_generator: Linear(mem,32) -> ReLU -> Linear(32,5) -> ReLU -> Linear(5, out)
    bias_gen_params = (
        (rnd(ks[7], (memory_size, 32)), rnd(ks[8], (32,))),
        (rnd(ks[9], (32, 5)), rnd(ks[10], (5,))),
        (rnd(ks[11], (5, output_dim)), rnd(ks[12], (output_dim,))),
    )

    weights, biases = parameter_generator_pallas(
        memory, weight_gen_params, bias_gen_params,
        input_dim=input_dim, output_dim=output_dim, num_nodes=num_nodes)
    weights, biases = jax.block_until_ready((weights, biases))

    w_ref, b_ref = parameter_generator_reference(
        memory, weight_gen_params, bias_gen_params,
        input_dim=input_dim, output_dim=output_dim, num_nodes=num_nodes)
    w_ref, b_ref = jax.block_until_ready((w_ref, b_ref))

    assert weights.shape == (B, num_nodes, input_dim, output_dim)
    assert biases.shape == (B, num_nodes, output_dim)
    assert jnp.allclose(weights, w_ref, atol=1e-3, rtol=1e-3), "weights mismatch vs reference"
    assert jnp.allclose(biases, b_ref, atol=1e-3, rtol=1e-3), "biases mismatch vs reference"

    # TODO(synk): the dynamic=False branch is a pure parameter passthrough
    # (returns nn.Parameter tensors with no computation) — nothing to kernelize.

    print("KERNEL_OK")
</pallas_src>

<mosaic_0001>
module attributes {stable_mosaic.version = 11 : i64} {
  func.func @_paramgen_kernel(%arg0: i32, %arg1: memref<32x32xf32, #tpu.memory_space<vmem>>, %arg2: memref<32x64xf32, #tpu.memory_space<vmem>>, %arg3: memref<1x64xf32, #tpu.memory_space<vmem>>, %arg4: memref<64x10xf32, #tpu.memory_space<vmem>>, %arg5: memref<1x10xf32, #tpu.memory_space<vmem>>, %arg6: memref<10x128xf32, #tpu.memory_space<vmem>>, %arg7: memref<1x128xf32, #tpu.memory_space<vmem>>, %arg8: memref<32x128xf32, #tpu.memory_space<vmem>>) attributes {dimension_semantics = [#tpu.dimension_semantics<parallel>], iteration_bounds = array<i64: 1>, scalar_prefetch = 0 : i64, scratch_operands = 0 : i64, tpu.core_type = #tpu.core_type<tc>, window_params = [{transform_indices = @transform_0, window_bounds = array<i64: 32, 32>}, {pipeline_mode = #tpu.pipeline_mode<synchronous>, transform_indices = @transform_1, window_bounds = array<i64: 32, 64>}, {pipeline_mode = #tpu.pipeline_mode<synchronous>, transform_indices = @transform_2, window_bounds = array<i64: 1, 64>}, {pipeline_mode = #tpu.pipeline_mode<synchronous>, transform_indices = @transform_3, window_bounds = array<i64: 64, 10>}, {pipeline_mode = #tpu.pipeline_mode<synchronous>, transform_indices = @transform_4, window_bounds = array<i64: 1, 10>}, {pipeline_mode = #tpu.pipeline_mode<synchronous>, transform_indices = @transform_5, window_bounds = array<i64: 10, 128>}, {pipeline_mode = #tpu.pipeline_mode<synchronous>, transform_indices = @transform_6, window_bounds = array<i64: 1, 128>}, {transform_indices = @transform_7, window_bounds = array<i64: 32, 128>}]} {
    %c0 = arith.constant 0 : index
    %c0_0 = arith.constant 0 : index
    %0 = vector.load %arg1[%c0, %c0_0] : memref<32x32xf32, #tpu.memory_space<vmem>>, vector<32x32xf32>
    %c0_1 = arith.constant 0 : index
    %c0_2 = arith.constant 0 : index
    %1 = vector.load %arg2[%c0_1, %c0_2] : memref<32x64xf32, #tpu.memory_space<vmem>>, vector<32x64xf32>
    %cst = arith.constant dense<0.000000e+00> : vector<32x64xf32>
    %2 = tpu.matmul %0, %1, %cst {dimension_numbers = #tpu.dot_dimension_numbers<[1], [0], [0], [1], [0, 0, 1, 1], [], []>} : vector<32x32xf32>, vector<32x64xf32>, vector<32x64xf32> -> vector<32x64xf32>
    %c0_3 = arith.constant 0 : index
    %c0_4 = arith.constant 0 : index
    %3 = vector.load %arg3[%c0_3, %c0_4] : memref<1x64xf32, #tpu.memory_space<vmem>>, vector<1x64xf32>
    %4 = vector.broadcast %3 : vector<1x64xf32> to vector<32x64xf32>
    %5 = arith.addf %2, %4 : vector<32x64xf32>
    %cst_5 = arith.constant 0.000000e+00 : f32
    %6 = vector.broadcast %cst_5 : f32 to vector<32x64xf32>
    %7 = arith.maximumf %5, %6 : vector<32x64xf32>
    %c0_6 = arith.constant 0 : index
    %c0_7 = arith.constant 0 : index
    %8 = vector.load %arg4[%c0_6, %c0_7] : memref<64x10xf32, #tpu.memory_space<vmem>>, vector<64x10xf32>
    %cst_8 = arith.constant dense<0.000000e+00> : vector<32x10xf32>
    %9 = tpu.matmul %7, %8, %cst_8 {dimension_numbers = #tpu.dot_dimension_numbers<[1], [0], [0], [1], [0, 0, 1, 1], [], []>} : vector<32x64xf32>, vector<64x10xf32>, vector<32x10xf32> -> vector<32x10xf32>
    %c0_9 = arith.constant 0 : index
    %c0_10 = arith.constant 0 : index
    %10 = vector.load %arg5[%c0_9, %c0_10] : memref<1x10xf32, #tpu.memory_space<vmem>>, vector<1x10xf32>
    %11 = vector.broadcast %10 : vector<1x10xf32> to vector<32x10xf32>
    %12 = arith.addf %9, %11 : vector<32x10xf32>
    %cst_11 = arith.constant 0.000000e+00 : f32
    %13 = vector.broadcast %cst_11 : f32 to vector<32x10xf32>
    %14 = arith.maximumf %12, %13 : vector<32x10xf32>
    %c0_12 = arith.constant 0 : index
    %c0_13 = arith.constant 0 : index
    %15 = vector.load %arg6[%c0_12, %c0_13] : memref<10x128xf32, #tpu.memory_space<vmem>>, vector<10x128xf32>
    %cst_14 = arith.constant dense<0.000000e+00> : vector<32x128xf32>
    %16 = tpu.matmul %14, %15, %cst_14 {dimension_numbers = #tpu.dot_dimension_numbers<[1], [0], [0], [1], [0, 0, 1, 1], [], []>} : vector<32x10xf32>, vector<10x128xf32>, vector<32x128xf32> -> vector<32x128xf32>
    %c0_15 = arith.constant 0 : index
    %c0_16 = arith.constant 0 : index
    %17 = vector.load %arg7[%c0_15, %c0_16] : memref<1x128xf32, #tpu.memory_space<vmem>>, vector<1x128xf32>
    %18 = vector.broadcast %17 : vector<1x128xf32> to vector<32x128xf32>
    %19 = arith.addf %16, %18 : vector<32x128xf32>
    %c0_17 = arith.constant 0 : index
    %c0_18 = arith.constant 0 : index
    %20 = vector.load %arg8[%c0_17, %c0_18] : memref<32x128xf32, #tpu.memory_space<vmem>>, vector<32x128xf32>
    tpu.vector_store %arg8[%c0_17, %c0_18], %19 {strides = array<i32>} : memref<32x128xf32, #tpu.memory_space<vmem>>, vector<32x128xf32>,
    return
  }
  func.func @transform_0(%arg0: i32) -> (i32, i32) {
    %c0_i32 = arith.constant 0 : i32
    %c0_i32_0 = arith.constant 0 : i32
    return %arg0, %c0_i32 : i32, i32
  }
  func.func @transform_1(%arg0: i32) -> (i32, i32) {
    %c0_i32 = arith.constant 0 : i32
    %c0_i32_0 = arith.constant 0 : i32
    %c0_i32_1 = arith.constant 0 : i32
    return %c0_i32, %c0_i32_0 : i32, i32
  }
  func.func @transform_2(%arg0: i32) -> (i32, i32) {
    %c0_i32 = arith.constant 0 : i32
    %c0_i32_0 = arith.constant 0 : i32
    %c0_i32_1 = arith.constant 0 : i32
    return %c0_i32, %c0_i32_0 : i32, i32
  }
  func.func @transform_3(%arg0: i32) -> (i32, i32) {
    %c0_i32 = arith.constant 0 : i32
    %c0_i32_0 = arith.constant 0 : i32
    %c0_i32_1 = arith.constant 0 : i32
    return %c0_i32, %c0_i32_0 : i32, i32
  }
  func.func @transform_4(%arg0: i32) -> (i32, i32) {
    %c0_i32 = arith.constant 0 : i32
    %c0_i32_0 = arith.constant 0 : i32
    %c0_i32_1 = arith.constant 0 : i32
    return %c0_i32, %c0_i32_0 : i32, i32
  }
  func.func @transform_5(%arg0: i32) -> (i32, i32) {
    %c0_i32 = arith.constant 0 : i32
    %c0_i32_0 = arith.constant 0 : i32
    %c0_i32_1 = arith.constant 0 : i32
    return %c0_i32, %c0_i32_0 : i32, i32
  }
  func.func @transform_6(%arg0: i32) -> (i32, i32) {
    %c0_i32 = arith.constant 0 : i32
    %c0_i32_0 = arith.constant 0 : i32
    %c0_i32_1 = arith.constant 0 : i32
    return %c0_i32, %c0_i32_0 : i32, i32
  }
  func.func @transform_7(%arg0: i32) -> (i32, i32) {
    %c0_i32 = arith.constant 0 : i32
    %c0_i32_0 = arith.constant 0 : i32
    return %arg0, %c0_i32 : i32, i32
  }
}

</mosaic_0001>

<bundles_post_ra>
// kernel: tpu_custom_call.1
= control target key start
LH: loop header
LB: loop body
LE: loop exit
PB: predicated region body
PF: predicated region fallthrough
CT: control target
= control target key end

     0   :  { %vm42_vm0 = vcmask 261120   ;;  %s661_s0 = inlined_call_operand.vmem [shape: f32[32,32], index: 0, kind: input, shape index: {}]   ;;  %s662_s1 = inlined_call_operand.vmem [shape: f32[32,64], index: 1, kind: input, shape index: {}]   ;;  %s663_s2 = inlined_call_operand.vmem [shape: f32[1,64], index: 2, kind: input, shape index: {}]   ;;  %s664_s3 = inlined_call_operand.vmem [shape: f32[64,10], index: 3, kind: input, shape index: {}]   ;;  %s665_s4 = inlined_call_operand.vmem [shape: f32[1,10], index: 4, kind: input, shape index: {}]   ;;  %s666_s5 = inlined_call_operand.vmem [shape: f32[10,128], index: 5, kind: input, shape index: {}]   ;;  %s667_s6 = inlined_call_operand.vmem [shape: f32[1,128], index: 6, kind: input, shape index: {}]   ;;  %s668_s7 = inlined_call_operand.hbm [shape: f32[32,128], index: 7, kind: output, shape index: {}]  }
   0x1   :  { %v31_v0 = vld [vmem:[%s662_s1] sm:$0xff]  ;;  %v32_v1 = vld [vmem:[%s662_s1 + $0x8] sm:$0xff]  ;;  %v33_v2 = vld [vmem:[%s662_s1 + $0x10] sm:$0xff] }
   0x2   :  { %v480_v3 = vpack.c.bf16 %v32_v1, %v31_v0  ;;  %v34_v4 = vld [vmem:[%s662_s1 + $0x18] sm:$0xff]  ;;  %v27_v5 = vld [vmem:[%s661_s0] sm:$0xff]  ;;  %v145_v8 = vld [vmem:[%s664_s3 + $0x8] sm:$0xff] }
   0x3   :  { %v484_v6 = vpack.c.bf16 %v34_v4, %v33_v2  ;;  %442 = vmatprep.mubr.msk.f32.mxu0 %vm42_vm0, %v27_v5  ;;  %v144_v7 = vld [vmem:[%s664_s3] sm:$0xff]  ;;  %v146_v9 = vld [vmem:[%s664_s3 + $0x10] sm:$0xff]  ;;  %v147_v10 = vld [vmem:[%s664_s3 + $0x18] sm:$0xff] }
   0x4   :  { %481 = vmatprep.subr.bf16.mxu0 %v480_v3  ;;  %v488_v11 = vpack.c.bf16 %v145_v8, %v144_v7  ;;  %v492_v12 = vpack.c.bf16 %v147_v10, %v146_v9 }
   0x5   :  { %483 = vmatpush3.bf16.msra.mxu0 %v480_v3 }
   0x6   :  { %12 = vsyncpa [#allocation3], 0  ;;  %485 = vmatprep.subr.bf16.mxu0 %v484_v6  ;;  %v148_v13 = vld [vmem:[%s664_s3 + $0x20] sm:$0xff]  ;;  %v149_v14 = vld [vmem:[%s664_s3 + $0x28] sm:$0xff]  ;;  %489 = vmatprep.subr.bf16.mxu1 %v488_v11  ;;  %vm283_vm1 = vcmask 1041408   ;;  %vm538_vm2 = vmmov 1  }
   0x7   :  { %491 = vmatpush3.bf16.msra.mxu1 %v488_v11  ;;  %v28_v15 = vld [vmem:[%s661_s0 + $0x8] sm:$0xff]  ;;  %v496_v16 = vpack.c.bf16 %v149_v14, %v148_v13  ;;  %v29_v17 = vld [vmem:[%s661_s0 + $0x10] sm:$0xff]  ;;  %v30_v18 = vld [vmem:[%s661_s0 + $0x18] sm:$0xff]  ;;  %vm159_vm4 = vcmask 523264   ;;  %vm270_vm5 = vcmask 80896  }
   0x8   :  { %493 = vmatprep.subr.bf16.mxu1 %v492_v12  ;;  %v150_v19 = vld [vmem:[%s664_s3 + $0x30] sm:$0xff]  ;;  %v151_v20 = vld [vmem:[%s664_s3 + $0x38] sm:$0xff]  ;;  %v261_v22 = vld [vmem:[%s666_s5] sm:$0xff] }
   0x9   :  { %487 = vmatpush3.bf16.msra.mxu0 %v484_v6  ;;  %v500_v21 = vpack.c.bf16 %v151_v20, %v150_v19  ;;  %v262_v23 = vld [vmem:[%s666_s5 + $0x8] sm:$0x3]  ;;  %vm505_vm3 = vmpackc.low %vm283_vm1, %vm538_vm2  ;;  %v392_v25 = vld [vmem:[%s663_s2] ss:$0 sm:$0xff] }
   0xa   :  { %v504_v24 = vpack.c.bf16 %v262_v23, %v261_v22  ;;  %v397_v38 = vld [vmem:[%s665_s4] ss:$0 sm:$0xff]  ;;  %s539_s4 = smov [#allocation2]  }
   0xb   :  { %495 = vmatpush3.bf16.msra.mxu1 %v492_v12  ;;  %v402_v51 = vld [vmem:[%s667_s6] ss:$0 sm:$0xff]  ;;  %s381_s15 = sshll.u32 %s539_s4, 4  ;;  %s382_s15 = int_to_ptr.vmem [resolvable:$true] %s381_s15 }
   0xc   :  { %443 = vmatmul.mubr.msk.f32.vlgmr.msra.gmra.mrb[0].mxu0 %vm42_vm0, %v28_v15  ;;  %497 = vmatprep.subr.bf16.mxu1 %v496_v16  ;;  %s514_s16 = scalar_lea.vmem %s382_s15, 512  ;;  %p519_p1 = scmp.lt.s32.totalorder %s382_s15, %s382_s15 }
   0xd   :  { %445 = vmatprep.mubr.msk.f32.mxu0 %vm42_vm0, %v29_v17  ;;  %506 = vmatprep.subr.msk.bf16.mxu0 %vm505_vm3, %v504_v24  ;;  %p515_p0 = scmp.ne.s32.totalorder %s382_s15, %s514_s16  ;;  %p520_p2 = scmp.lt.s32.totalorder %s514_s16, %s514_s16 }
   0xe   :  { %509 = vmatpush3.bf16.msk.msra.mxu0 %vm505_vm3, %v504_v24 }
   0xf   :  { %499 = vmatpush3.bf16.msra.mxu1 %v496_v16  ;;  %p521_p3 = por %p520_p2, %p519_p1 }
  0x10   :  { %446 = vmatmul.mubr.msk.f32.gmra.mrb[2].mxu0 %vm42_vm0, %v30_v18  ;;  %501 = vmatprep.subr.bf16.mxu1 %v500_v21 }
  0x11   :  { %p522_p4 = pnand %p521_p3, %p515_p0 }
  0x13   :  { %503 = vmatpush3.bf16.msra.mxu1 %v500_v21 }
  0xdf   :  { %v444_v26 = vpop.f32.mrb[0].mxu0 }
  0xe0   :  { %v127_v27 = vadd.f32 %v444_v26, %v392_v25  ;;  %v121_v28 = vpop.f32.mrb[1].mxu0 }
  0xe1   :  { %v122_v29 = vadd.f32 %v392_v25, %v121_v28 }
  0xe2   :  { %v141_v32 = vmax.f32 %v127_v27, 0.0 }
  0xe3   :  { %v140_v30 = vmax.f32 %v122_v29, 0.0  ;;  %v447_v31 = vpop.f32.mrb[2].mxu0 }
  0xe4   :  { %v137_v33 = vadd.f32 %v447_v31, %v392_v25  ;;  %v131_v34 = vpop.f32.mrb[3].mxu0 }
  0xe5   :  { %v132_v35 = vadd.f32 %v392_v25, %v131_v34  ;;  %464 = vmatprep.mubr.msk.f32.mxu1 %vm159_vm4, %v140_v30 }
  0xe6   :  { %465 = vmatmul.mubr.msk.f32.vlgmr.msra.gmra.mrb[0].mxu1 %vm159_vm4, %v141_v32  ;;  %v143_v37 = vmax.f32 %v137_v33, 0.0 }
  0xe7   :  { %v142_v36 = vmax.f32 %v132_v35, 0.0 }
  0xe9   :  { %467 = vmatprep.mubr.msk.f32.mxu1 %vm159_vm4, %v142_v36 }
  0xea   :  { %468 = vmatmul.mubr.msk.f32.gmra.mrb[2].mxu1 %vm159_vm4, %v143_v37 }
 0x1b9   :  { %v466_v39 = vpop.f32.mrb[0].mxu1 }
 0x1ba   :  { %v244_v40 = vadd.f32 %v466_v39, %v397_v38  ;;  %v238_v41 = vpop.f32.mrb[1].mxu1 }
 0x1bb   :  { %v239_v42 = vadd.f32 %v397_v38, %v238_v41 }
 0x1bc   :  { %v258_v45 = vmax.f32 %v244_v40, 0.0 }
 0x1bd   :  { %v257_v43 = vmax.f32 %v239_v42, 0.0  ;;  %v469_v44 = vpop.f32.mrb[2].mxu1 }
 0x1be   :  { %v254_v46 = vadd.f32 %v469_v44, %v397_v38  ;;  %v248_v47 = vpop.f32.mrb[3].mxu1 }
 0x1bf   :  { %v249_v48 = vadd.f32 %v397_v38, %v248_v47  ;;  %474 = vmatprep.mubr.msk.f32.mxu0 %vm270_vm5, %v257_v43 }
 0x1c0   :  { %475 = vmatmul.mubr.msk.f32.vlgmr.msra.gmra.mrb[4].mxu0 %vm270_vm5, %v258_v45  ;;  %v260_v50 = vmax.f32 %v254_v46, 0.0 }
 0x1c1   :  { %v259_v49 = vmax.f32 %v249_v48, 0.0 }
 0x1c3   :  { %477 = vmatprep.mubr.msk.f32.mxu0 %vm270_vm5, %v259_v49 }
 0x1c4   :  { %478 = vmatmul.mubr.msk.f32.gmra.mrb[6].mxu0 %vm270_vm5, %v260_v50 }
 0x293   :  { %v476_v52 = vpop.f32.mrb[4].mxu0 }
 0x294   :  { %v359_v53 = vadd.f32 %v476_v52, %v402_v51  ;;  %v353_v54 = vpop.f32.mrb[5].mxu0 }
 0x295   :  { %v354_v55 = vadd.f32 %v402_v51, %v353_v54 }
 0x296   :  { %373 = vst [vmem:[#allocation2 + $0x8] sm:$0xff] %v359_v53 }
 0x297   :  { %372 = vst [vmem:[#allocation2] sm:$0xff] %v354_v55  ;;  %v479_v56 = vpop.f32.mrb[6].mxu0 }
 0x298   :  { %v369_v57 = vadd.f32 %v479_v56, %v402_v51  ;;  %v363_v58 = vpop.f32.mrb[7].mxu0 }
 0x299   :  { %v364_v59 = vadd.f32 %v402_v51, %v363_v58 }
 0x29a   :  { %375 = vst [vmem:[#allocation2 + $0x18] sm:$0xff] %v369_v57 }
 0x29b   :  { %374 = vst [vmem:[#allocation2 + $0x10] sm:$0xff] %v364_v59 }
 0x29c   :  { %525 = shalt.err (!%p522_p4)
}
 0x29d   :  { %s526_s17 = scalar_lea.hbm %s668_s7, 512 }
 0x29e   :  { %p527_p5 = scmp.ne.s32.totalorder %s668_s7, %s526_s17  ;;  %p530_p6 = scmp.lt.u32.totalorder %s526_s17, %s668_s7 }
 0x2a0   :  { %p532_p7 = pnand %p530_p6, %p527_p5 }
 0x2a2   :  { %535 = shalt.err (!%p532_p7)
}
 0x2a3   :  { %s540_s22 = smov 128   ;;  %s541_s23 = smov 8  }
 0x2a4   :  { %387 = dma.vmem_to_hbm [thread:$0]  %s382_s15, 512, %s668_s7, [#allocation3], %s540_s22, %s540_s22, %s541_s23  }
 0x2a5   :  { %536 = dma.done.wait [#allocation3], 512  }
 0x2a6   :  { %537 = vsyncadd [#allocation3], 4294966784 }
 0x2a7   :  { %391 = vsyncpa [#allocation3], 1 }

</bundles_post_ra>
